<compile_context>
chip_gen: v6e
topology: v6e:2x2x1
jax: 0.10.0
libtpu: 0.0.40
codegen_flags: <defaults>
</compile_context>

<pallas_src>
import jax
import jax.numpy as jnp
from jax.experimental import pallas as pl
from jax.experimental.pallas import tpu as pltpu  # noqa: F401  (imported for TPU backend availability)

_LANE = 128     # lane width (last dim)
_SUBLANE = 8    # f32 sublane multiple (second-to-last dim)


def fused_affine_kernel(x_ref, w_ref, o_ref):
    # Single grid point; inputs are already padded to native tiles so loads/stores
    # are unmasked and the single jnp.dot is the only MXU push.
    o_ref[...] = jnp.dot(x_ref[...], w_ref[...], preferred_element_type=jnp.float32)


def _round_up(n, m):
    return -(-n // m) * m


@jax.jit
def net1_forward(x, params):
    """x: (N, 5) float32. params: transposed weights (in, out) and biases (1, out)."""
    w1, b1 = params["w1"], params["b1"]   # (5, 4), (1, 4)
    w2, b2 = params["w2"], params["b2"]   # (4, 3), (1, 3)
    w3, b3 = params["w3"], params["b3"]   # (3, 2), (1, 2)

    N, in_f = x.shape
    # --- Algebraic fusion of the three affine layers (no nonlinearities exist) ---
    w_fused = w1 @ w2 @ w3                         # (5, 2)
    b_fused = b1 @ w2 @ w3 + b2 @ w3 + b3          # (1, 2)
    out_f = w_fused.shape[1]

    n_pad = max(_SUBLANE, _round_up(N, _SUBLANE))

    # x augmented with a constant-1 column (folds bias into the matmul),
    # zero-padded to a native (8, 128) f32 tile.
    x_pad = jnp.zeros((n_pad, _LANE), jnp.float32)
    x_pad = x_pad.at[:N, :in_f].set(x)
    x_pad = x_pad.at[:N, in_f].set(1.0)

    # Single packed parameter slab: rows [0:5] = fused W, row 5 = fused bias.
    w_pad = jnp.zeros((_LANE, _LANE), jnp.float32)
    w_pad = w_pad.at[:in_f, :out_f].set(w_fused)
    w_pad = w_pad.at[in_f, :out_f].set(b_fused[0])

    full = lambda shape: pl.BlockSpec(shape, lambda: (0,) * len(shape))
    out_pad = pl.pallas_call(
        fused_affine_kernel,
        out_shape=jax.ShapeDtypeStruct((n_pad, _LANE), jnp.float32),
        grid_spec=pl.GridSpec(
            grid=(),  # whole (tiny) problem is one block
            in_specs=[full(x_pad.shape), full(w_pad.shape)],
            out_specs=full((n_pad, _LANE)),
        ),
    )(x_pad, w_pad)

    # Slice the lane-dense padded output back to the logical (N, 2).
    return out_pad[:N, :out_f]


def init_params(key):
    """Deterministic synthetic init matching nn.Linear shapes.
    PyTorch stores Linear weight as (out, in); we keep the (in, out) transpose."""
    ks = jax.random.split(key, 6)

    def linear(kw, kb, fan_in, fan_out):
        bound = 1.0 / jnp.sqrt(fan_in)
        w = jax.random.uniform(kw, (fan_out, fan_in), jnp.float32, -bound, bound)
        b = jax.random.uniform(kb, (fan_out,), jnp.float32, -bound, bound)
        return w.T, b.reshape(1, fan_out)  # (in, out), (1, out)

    w1, b1 = linear(ks[0], ks[1], 5, 4)
    w2, b2 = linear(ks[2], ks[3], 4, 3)
    w3, b3 = linear(ks[4], ks[5], 3, 2)
    return {"w1": w1, "b1": b1, "w2": w2, "b2": b2, "w3": w3, "b3": b3}


if __name__ == "__main__":
    key = jax.random.PRNGKey(0)
    k_x, k_p = jax.random.split(key)

    # Matches the PyTorch script: x = torch.randn(size=(2, 5))
    x = jax.random.normal(k_x, (2, 5), dtype=jnp.float32)
    params = init_params(k_p)

    out = net1_forward(x, params)
    out = jax.block_until_ready(out)

    # Pure-JAX reference of the original (unfused) three-layer forward pass.
    ref = x
    for wn, bn in (("w1", "b1"), ("w2", "b2"), ("w3", "b3")):
        ref = ref @ params[wn] + params[bn]

    assert out.shape == (2, 2)
    assert jnp.allclose(out, ref, atol=1e-5, rtol=1e-4), (out, ref)

    print("KERNEL_OK")
</pallas_src>

<mosaic_0001>
module attributes {stable_mosaic.version = 11 : i64} {
  func.func @fused_affine_kernel(%arg0: memref<8x128xf32, #tpu.memory_space<vmem>>, %arg1: memref<128x128xf32, #tpu.memory_space<vmem>>, %arg2: memref<8x128xf32, #tpu.memory_space<vmem>>) attributes {dimension_semantics = [], scalar_prefetch = 0 : i64, scratch_operands = 0 : i64, tpu.core_type = #tpu.core_type<tc>} {
    %c0 = arith.constant 0 : index
    %c0_0 = arith.constant 0 : index
    %0 = vector.load %arg0[%c0, %c0_0] : memref<8x128xf32, #tpu.memory_space<vmem>>, vector<8x128xf32>
    %c0_1 = arith.constant 0 : index
    %c0_2 = arith.constant 0 : index
    %1 = vector.load %arg1[%c0_1, %c0_2] : memref<128x128xf32, #tpu.memory_space<vmem>>, vector<128x128xf32>
    %cst = arith.constant dense<0.000000e+00> : vector<8x128xf32>
    %2 = tpu.matmul %0, %1, %cst {dimension_numbers = #tpu.dot_dimension_numbers<[1], [0], [0], [1], [0, 0, 1, 1], [], []>} : vector<8x128xf32>, vector<128x128xf32>, vector<8x128xf32> -> vector<8x128xf32>
    %c0_3 = arith.constant 0 : index
    %c0_4 = arith.constant 0 : index
    %3 = vector.load %arg2[%c0_3, %c0_4] : memref<8x128xf32, #tpu.memory_space<vmem>>, vector<8x128xf32>
    tpu.vector_store %arg2[%c0_3, %c0_4], %2 {strides = array<i32>} : memref<8x128xf32, #tpu.memory_space<vmem>>, vector<8x128xf32>,
    return
  }
}

</mosaic_0001>

<bundles_post_ra>
// kernel: net1_forward.1
= control target key start
LH: loop header
LB: loop body
LE: loop exit
PB: predicated region body
PF: predicated region fallthrough
CT: control target
= control target key end

     0   :  { %v157_v0 = vmov 0.0   ;;  %vm158_vm0 = vmmov 0   ;;  %s228_s1 = inlined_call_operand.vmem [shape: f32[128,128], index: 1, kind: input, shape index: {}]   ;;  %s229_s0 = inlined_call_operand.vmem [shape: f32[8,128], index: 0, kind: input, shape index: {}]   ;;  %s230_s2 = inlined_call_operand.vmem [shape: f32[8,128], index: 2, kind: output, shape index: {}]  }
   0x1   :  { %120 = vmatprep.subr.mxu0 %v157_v0  ;;  %v27_v1 = vld [vmem:[%s228_s1 + $0x78] sm:$0xff]  ;;  %v26_v2 = vld [vmem:[%s228_s1 + $0x70] sm:$0xff]  ;;  %152 = vmatprep.mubr.msk.f32.mxu0 %vm158_vm0, %v157_v0  ;;  %v25_v3 = vld [vmem:[%s228_s1 + $0x68] sm:$0xff] }
   0x2   :  { %121 = vmatpush3.msra.mxu0 %v27_v1  ;;  %v24_v4 = vld [vmem:[%s228_s1 + $0x60] sm:$0xff]  ;;  %v23_v5 = vld [vmem:[%s228_s1 + $0x58] sm:$0xff]  ;;  %v22_v6 = vld [vmem:[%s228_s1 + $0x50] sm:$0xff] }
   0x3   :  { %122 = vmatprep.subr.mxu0 %v157_v0  ;;  %v21_v7 = vld [vmem:[%s228_s1 + $0x48] sm:$0xff]  ;;  %v20_v8 = vld [vmem:[%s228_s1 + $0x40] sm:$0xff]  ;;  %v19_v9 = vld [vmem:[%s228_s1 + $0x38] sm:$0xff] }
   0x4   :  { %123 = vmatpush3.msra.mxu0 %v26_v2  ;;  %v18_v10 = vld [vmem:[%s228_s1 + $0x30] sm:$0xff]  ;;  %v17_v11 = vld [vmem:[%s228_s1 + $0x28] sm:$0xff]  ;;  %v16_v12 = vld [vmem:[%s228_s1 + $0x20] sm:$0xff] }
   0x5   :  { %124 = vmatprep.subr.mxu0 %v157_v0  ;;  %v15_v13 = vld [vmem:[%s228_s1 + $0x18] sm:$0xff]  ;;  %v14_v14 = vld [vmem:[%s228_s1 + $0x10] sm:$0xff]  ;;  %v13_v15 = vld [vmem:[%s228_s1 + $0x8] sm:$0xff] }
   0x6   :  { %125 = vmatpush3.msra.mxu0 %v25_v3  ;;  %v12_v16 = vld [vmem:[%s228_s1] sm:$0xff] }
   0x7   :  { %126 = vmatprep.subr.mxu0 %v157_v0  ;;  %v11_v17 = vld [vmem:[%s229_s0] sm:$0xff] }
   0x8   :  { %127 = vmatpush3.msra.mxu0 %v24_v4 }
   0x9   :  { %128 = vmatprep.subr.mxu0 %v157_v0 }
   0xa   :  { %129 = vmatpush3.msra.mxu0 %v23_v5 }
   0xb   :  { %130 = vmatprep.subr.mxu0 %v157_v0 }
   0xc   :  { %131 = vmatpush3.msra.mxu0 %v22_v6 }
   0xd   :  { %132 = vmatprep.subr.mxu0 %v157_v0 }
   0xe   :  { %133 = vmatpush3.msra.mxu0 %v21_v7 }
   0xf   :  { %134 = vmatprep.subr.mxu0 %v157_v0 }
  0x10   :  { %135 = vmatpush3.msra.mxu0 %v20_v8 }
  0x11   :  { %136 = vmatprep.subr.mxu0 %v157_v0 }
  0x12   :  { %137 = vmatpush3.msra.mxu0 %v19_v9 }
  0x13   :  { %138 = vmatprep.subr.mxu0 %v157_v0 }
  0x14   :  { %139 = vmatpush3.msra.mxu0 %v18_v10 }
  0x15   :  { %140 = vmatprep.subr.mxu0 %v157_v0 }
  0x16   :  { %141 = vmatpush3.msra.mxu0 %v17_v11 }
  0x17   :  { %142 = vmatprep.subr.mxu0 %v157_v0 }
  0x18   :  { %143 = vmatpush3.msra.mxu0 %v16_v12 }
  0x19   :  { %144 = vmatprep.subr.mxu0 %v157_v0 }
  0x1a   :  { %145 = vmatpush3.msra.mxu0 %v15_v13 }
  0x1b   :  { %146 = vmatprep.subr.mxu0 %v157_v0 }
  0x1c   :  { %147 = vmatpush3.msra.mxu0 %v14_v14 }
  0x1d   :  { %148 = vmatprep.subr.mxu0 %v157_v0 }
  0x1e   :  { %149 = vmatpush3.msra.mxu0 %v13_v15 }
  0x1f   :  { %150 = vmatprep.subr.mxu0 %v157_v0 }
  0x20   :  { %151 = vmatpush3.msra.mxu0 %v12_v16 }
  0x21   :  { %153 = vmatmul.mubr.f32.vlgmr.msra.gmra.mxu0 %v11_v17 }
  0xe1   :  { %v94_v18 = vpop.f32.mrf.mxu0 }
  0xe2   :  { %98 = vst [vmem:[%s230_s2] sm:$0xff] %v94_v18 }
  0xe3   :  { %v154_v19 = vpop.f32.mrf.mxu0 }

</bundles_post_ra>
